<compile_context>
chip_gen: v5e
topology: v5e:2x2
jax: 0.10.0
libtpu: 0.0.40
codegen_flags: <defaults>
</compile_context>

<pallas_src>
import math
import numpy as np
import jax
import jax.numpy as jnp
from jax.experimental import pallas as pl
from jax.experimental.pallas import tpu as pltpu


# ----------------------------------------------------------------------------
# Static graph helpers (direct ports of the PyTorch module's __init__ logic)
# ----------------------------------------------------------------------------
def calc_edge_mat(edges):
    edge_num = len(edges)
    edge_mat = [[100000] * edge_num for _ in range(edge_num)]
    for i in range(edge_num):
        edge_mat[i][i] = 0
    for i, a in enumerate(edges):
        for j, b in enumerate(edges):
            link = 0
            for x in range(2):
                for y in range(2):
                    if a[x] == b[y]:
                        link = 1
            if link:
                edge_mat[i][j] = 1
    for k in range(edge_num):
        for i in range(edge_num):
            for j in range(edge_num):
                edge_mat[i][j] = min(edge_mat[i][j], edge_mat[i][k] + edge_mat[k][j])
    return edge_mat


def find_neighbor(edges, d):
    edge_mat = calc_edge_mat(edges)
    neighbor_list = []
    edge_num = len(edge_mat)
    for i in range(edge_num):
        neighbor = []
        for j in range(edge_num):
            if edge_mat[i][j] <= d:
                neighbor.append(j)
        neighbor_list.append(neighbor)
    global_part_neighbor = neighbor_list[0].copy()
    for i in global_part_neighbor:
        neighbor_list[i].append(edge_num)
    neighbor_list.append(global_part_neighbor)
    return neighbor_list


def build_skeleton_conv_mask(neighbour_list, in_channels, out_channels, kernel_size, joint_num):
    in_cpj = in_channels // joint_num
    out_cpj = out_channels // joint_num
    mask = np.zeros((out_channels, in_channels, kernel_size), np.float32)
    for i, neighbour in enumerate(neighbour_list):
        expanded = []
        for k in neighbour:
            for c in range(in_cpj):
                expanded.append(k * in_cpj + c)
        mask[out_cpj * i:out_cpj * (i + 1), expanded, :] = 1.0
    return mask


def build_skeleton_pool(edges, channels_per_edge, last_pool):
    """Replicates SkeletonPool.__init__ (mean pooling matrix)."""
    edge_num = len(edges) + 1
    seq_list = []
    pooling_list = []
    new_edges = []
    degree = [0] * 100
    for e in edges:
        degree[e[0]] += 1
        degree[e[1]] += 1

    def find_seq(j, seq):
        if degree[j] > 2 and j != 0:
            seq_list.append(seq)
            seq = []
        if degree[j] == 1:
            seq_list.append(seq)
            return
        for idx, edge in enumerate(edges):
            if edge[0] == j:
                find_seq(edge[1], seq + [idx])

    find_seq(0, [])
    for seq in seq_list:
        if last_pool:
            pooling_list.append(seq)
            continue
        if len(seq) % 2 == 1:
            pooling_list.append([seq[0]])
            new_edges.append(edges[seq[0]])
            seq = seq[1:]
        for i in range(0, len(seq), 2):
            pooling_list.append([seq[i], seq[i + 1]])
            new_edges.append([edges[seq[i]][0], edges[seq[i + 1]][1]])
    pooling_list.append([edge_num - 1])

    weight = np.zeros((len(pooling_list) * channels_per_edge,
                       edge_num * channels_per_edge), np.float32)
    for i, pair in enumerate(pooling_list):
        for j in pair:
            for c in range(channels_per_edge):
                weight[i * channels_per_edge + c, j * channels_per_edge + c] = 1.0 / len(pair)
    return weight, new_edges, pooling_list


# ----------------------------------------------------------------------------
# Fused whole-encoder Pallas kernel
# ----------------------------------------------------------------------------
def _reflect_pad_time(x, pad):
    """PyTorch-style 'reflect' padding along the last (time) axis of a (C, T) value."""
    if pad == 0:
        return x
    T = x.shape[-1]
    left = [x[:, j:j + 1] for j in range(pad, 0, -1)]          # cols pad, pad-1, ..., 1
    right = [x[:, T - 2 - j:T - 1 - j] for j in range(pad)]    # cols T-2, T-3, ..., T-1-pad
    return jnp.concatenate(left + [x] + right, axis=1)


def _make_encoder_kernel(layer_meta, b_tile, stride, padding):
    """layer_meta: tuple of (K, C_in, P_out, T_in, T_out) per layer (static python ints)."""
    num_layers = len(layer_meta)

    def kernel(*refs):
        x_ref = refs[0]
        w_refs = [refs[1 + 2 * l] for l in range(num_layers)]
        b_refs = [refs[2 + 2 * l] for l in range(num_layers)]
        o_ref = refs[1 + 2 * num_layers]

        # Per-batch-element activations, reflect-padded along time, kept as (C, Tpad) values.
        acts = [_reflect_pad_time(x_ref[b, :, :], padding) for b in range(b_tile)]

        for l in range(num_layers):
            K, C, P, T_in, Tp = layer_meta[l]
            Tpad = T_in + 2 * padding

            # 0/1 selection matrices: sel_k[u, t] = 1 iff u == stride*t + k, so
            # dot(act (C,Tpad), sel_k (Tpad,Tp)) == act[:, k::stride][:, :Tp] (the k-th tap).
            # The strided "im2col" gather therefore runs on the otherwise-idle MXU — no
            # strided / gather memory access inside the kernel.
            u = jax.lax.broadcasted_iota(jnp.int32, (Tpad, Tp), 0)
            t = jax.lax.broadcasted_iota(jnp.int32, (Tpad, Tp), 1)
            sels = [(u == stride * t + k).astype(jnp.float32) for k in range(K)]

            cols = []
            for b in range(b_tile):
                taps = [jnp.dot(acts[b], sels[k], preferred_element_type=jnp.float32)
                        for k in range(K)]                                   # K x (C, Tp)
                cols.append(jnp.concatenate(taps, axis=0) if K > 1 else taps[0])  # (K*C, Tp)
            rhs = cols[0] if b_tile == 1 else jnp.concatenate(cols, axis=1)  # (K*C, B*Tp)

            # Single MXU contraction over K*C (SkeletonPool already folded into the weight),
            # then bias + LeakyReLU(0.2).  Output lanes = B_tile*Tp (lane-dense packing).
            z = jnp.dot(w_refs[l][...], rhs, preferred_element_type=jnp.float32)  # (P, B*Tp)
            z = z + b_refs[l][...]
            y = jnp.where(z >= 0.0, z, 0.2 * z)

            if l + 1 < num_layers:
                acts = [_reflect_pad_time(y[:, b * Tp:(b + 1) * Tp], padding)
                        for b in range(b_tile)]
            else:
                for b in range(b_tile):
                    o_ref[b, :, :] = y[:, b * Tp:(b + 1) * Tp].astype(o_ref.dtype)

    return kernel


def _choose_batch_tile(N, Tp0, lane_target=256):
    """Largest divisor of N that packs ~lane_target lanes (B_tile*Tp0) while keeping >=2
    parallel grid steps (v7x has two TensorCores)."""
    if N <= 1:
        return max(N, 1)
    want = max(1, (lane_target + Tp0 - 1) // Tp0)
    cap = min(want, N // 2)
    best = 1
    for d in range(1, cap + 1):
        if N % d == 0:
            best = d
    return best


def encoder_forward(x, layers, kernel_size, padding, stride=2):
    """Full Encoder forward as a single fused pallas_call."""
    N, C0, T = x.shape
    num_layers = len(layers)

    # Per-layer static time/channel metadata.
    meta = []
    T_in = T
    for p in layers:
        P, KC = p["w_flat"].shape
        C = KC // kernel_size
        assert T_in > padding, "reflect padding requires T > padding at every layer"
        Tpad = T_in + 2 * padding
        Tp = (Tpad - kernel_size) // stride + 1
        assert Tp >= 2
        meta.append((kernel_size, C, P, T_in, Tp))
        T_in = Tp
    assert C0 == meta[0][1], (C0, meta[0][1])
    P_last, Tp_last = meta[-1][2], meta[-1][4]

    b_tile = _choose_batch_tile(N, meta[0][4])
    grid = (N // b_tile,)

    kernel = _make_encoder_kernel(tuple(meta), b_tile, stride, padding)

    in_specs = [pl.BlockSpec((b_tile, C0, T), lambda n: (n, 0, 0))]
    flat_params = []
    for p in layers:
        P, KC = p["w_flat"].shape
        # Constant-index blocks: weights/biases stay VMEM-resident across the batch grid.
        in_specs.append(pl.BlockSpec((P, KC), lambda n: (0, 0)))
        in_specs.append(pl.BlockSpec((P, 1), lambda n: (0, 0)))
        flat_params += [p["w_flat"], p["b_col"]]

    out_spec = pl.BlockSpec((b_tile, P_last, Tp_last), lambda n: (n, 0, 0))

    # VMEM budget computed from actual sizes (fits v7x's 64 MiB; clamp to <=32 MiB).
    param_bytes = 4 * sum(p["w_flat"].size + p["b_col"].size for p in layers)
    block_bytes = 4 * (b_tile * C0 * T + b_tile * P_last * Tp_last)
    work_bytes = 0
    flops = 0
    for (K, C, P, T_in, Tp) in meta:
        Tpad = T_in + 2 * padding
        work_bytes += 4 * (b_tile * (C * Tpad + K * C * Tp + P * Tp) + K * Tpad * Tp)
        flops += 2 * N * (K * C * Tpad * Tp + P * K * C * Tp)
    vmem_limit = int(min(32 * 1024 * 1024,
                         max(4 * 1024 * 1024,
                             2 * (param_bytes + block_bytes) + 8 * work_bytes)))
    bytes_accessed = 4 * (x.size + N * P_last * Tp_last) + param_bytes

    out = pl.pallas_call(
        kernel,
        out_shape=jax.ShapeDtypeStruct((N, P_last, Tp_last), jnp.float32),
        grid=grid,
        in_specs=in_specs,
        out_specs=out_spec,
        compiler_params=pltpu.CompilerParams(
            dimension_semantics=("parallel",),
            vmem_limit_bytes=vmem_limit,
        ),
        cost_estimate=pl.CostEstimate(
            flops=flops, transcendentals=0, bytes_accessed=bytes_accessed),
    )(x, *flat_params)
    return out   # (N, C_out, T_out) — exactly the module's NCT output layout


# ----------------------------------------------------------------------------
# Encoder parameter construction (deterministic synthetic init, skeleton mask applied,
# pool matrix folded into the conv weight, K taps pre-flattened for the Pallas path)
# ----------------------------------------------------------------------------
def build_encoder(args, topology, key):
    channel_base = [4]  # quaternion + swap_dim == 1
    for _ in range(args["num_layers"]):
        channel_base.append(channel_base[-1] * 2)
    topologies = [topology]
    edge_num = [len(topology) + 1]
    kernel_size = args["kernel_size"]
    padding = (kernel_size - 1) // 2

    layers = []
    for i in range(args["num_layers"]):
        neighbor_list = find_neighbor(topologies[i], args["skeleton_dist"])
        in_channels = channel_base[i] * edge_num[i]
        out_channels = channel_base[i + 1] * edge_num[i]
        joint_num = edge_num[i]

        mask = build_skeleton_conv_mask(neighbor_list, in_channels, out_channels,
                                        kernel_size, joint_num)
        key, k1, k2 = jax.random.split(key, 3)
        bound = 1.0 / math.sqrt(in_channels * kernel_size)
        w = jax.random.uniform(k1, (out_channels, in_channels, kernel_size),
                               jnp.float32, -bound, bound)
        w_conv = w * jnp.asarray(mask)                      # masked skeleton weight
        bias = jax.random.uniform(k2, (out_channels,), jnp.float32, -bound, bound)

        last_pool = (i == args["num_layers"] - 1)
        channels_per_edge = out_channels // len(neighbor_list)
        pool_w, new_edges, _ = build_skeleton_pool(topologies[i], channels_per_edge, last_pool)
        w_pool = jnp.asarray(pool_w)

        # Fold the (linear, pre-activation) pool into the conv:
        #   LeakyReLU(Wpool @ (conv(x, Wconv) + b)) == LeakyReLU(conv(x, Wfused) + bfused)
        # For layer 0, drop the weight column that only ever multiplies the zero channel
        # appended by Encoder.forward (quaternion, pos_repr != '4d', swap_dim == 1).
        w_eff = w_conv
        if (i == 0 and args["rotation"] == "quaternion"
                and args.get("pos_repr") != "4d" and args["swap_dim"] == 1):
            w_eff = w_conv[:, :in_channels - 1, :]
        wf = jnp.einsum("po,ock->pkc", w_pool, w_eff, precision="highest")   # (P, K, C)
        w_flat = wf.reshape(wf.shape[0], -1)                                 # (P, K*C)
        b_col = jnp.einsum("po,o->p", w_pool, bias, precision="highest").reshape(-1, 1)

        layers.append(dict(w_conv=w_conv, bias=bias, w_pool=w_pool,
                           w_flat=w_flat, b_col=b_col))
        topologies.append(new_edges)
        edge_num.append(len(new_edges) + 1)
    return layers, padding


# ----------------------------------------------------------------------------
# Pure-JAX reference (no Pallas, unfused weights, explicit zero-channel concat)
# ----------------------------------------------------------------------------
def reference_forward(x, layers, kernel_size, padding):
    x = jnp.concatenate([x, jnp.zeros_like(x[:, :1, :])], axis=1)
    for p in layers:
        xp = jnp.pad(x, ((0, 0), (0, 0), (padding, padding)), mode="reflect")
        y = jax.lax.conv_general_dilated(
            xp, p["w_conv"], window_strides=(2,), padding="VALID",
            dimension_numbers=("NCH", "OIH", "NCH"),
            precision=jax.lax.Precision.HIGHEST)
        y = y + p["bias"][None, :, None]
        z = jnp.einsum("pc,nct->npt", p["w_pool"], y, precision="highest")
        x = jnp.where(z >= 0.0, z, 0.2 * z)
    return x


if __name__ == "__main__":
    args = dict(window_size=16, rotation="quaternion", swap_dim=1, pos_repr="3d",
                add_offset=False, kernel_size=3, num_layers=2, skeleton_dist=1,
                padding_mode="reflect", skeleton_pool="mean")
    # small skeleton: 7 joints, 6 edges (two chains from the root)
    topology = [[0, 1], [1, 2], [2, 3], [0, 4], [4, 5], [5, 6]]

    key = jax.random.PRNGKey(0)
    key, kx = jax.random.split(key)
    layers, padding = build_encoder(args, topology, key)

    N, T = 2, 16
    # forward() appends one zero channel -> conv sees 4 * (len(topology)+1) = 28 channels
    in_ch = 4 * (len(topology) + 1) - 1   # 27 real input channels
    x = jax.random.normal(kx, (N, in_ch, T), jnp.float32)

    fwd = jax.jit(encoder_forward, static_argnums=(2, 3))
    out = jax.block_until_ready(fwd(x, layers, args["kernel_size"], padding))

    ref = reference_forward(x, layers, args["kernel_size"], padding)
    assert out.shape == ref.shape, (out.shape, ref.shape)
    np.testing.assert_allclose(np.asarray(out), np.asarray(ref), rtol=2e-3, atol=2e-3)
    print("KERNEL_OK")
</pallas_src>

<mosaic_0001>
module attributes {stable_mosaic.version = 11 : i64} {
  func.func @kernel(%arg0: i32, %arg1: memref<1x27x16xf32, #tpu.memory_space<vmem>>, %arg2: memref<40x81xf32, #tpu.memory_space<vmem>>, %arg3: memref<40x1xf32, #tpu.memory_space<vmem>>, %arg4: memref<48x120xf32, #tpu.memory_space<vmem>>, %arg5: memref<48x1xf32, #tpu.memory_space<vmem>>, %arg6: memref<1x48x4xf32, #tpu.memory_space<vmem>>) attributes {dimension_semantics = [#tpu.dimension_semantics<parallel>], iteration_bounds = array<i64: 2>, scalar_prefetch = 0 : i64, scratch_operands = 0 : i64, tpu.core_type = #tpu.core_type<tc>, window_params = [{transform_indices = @transform_0, window_bounds = array<i64: 1, 27, 16>}, {pipeline_mode = #tpu.pipeline_mode<synchronous>, transform_indices = @transform_1, window_bounds = array<i64: 40, 81>}, {pipeline_mode = #tpu.pipeline_mode<synchronous>, transform_indices = @transform_2, window_bounds = array<i64: 40, 1>}, {pipeline_mode = #tpu.pipeline_mode<synchronous>, transform_indices = @transform_3, window_bounds = array<i64: 48, 120>}, {pipeline_mode = #tpu.pipeline_mode<synchronous>, transform_indices = @transform_4, window_bounds = array<i64: 48, 1>}, {transform_indices = @transform_5, window_bounds = array<i64: 1, 48, 4>}]} {
    %c0 = arith.constant 0 : index
    %c0_0 = arith.constant 0 : index
    %c0_1 = arith.constant 0 : index
    %0 = vector.load %arg1[%c0, %c0_0, %c0_1] : memref<1x27x16xf32, #tpu.memory_space<vmem>>, vector<1x27x16xf32>
    %1 = vector.shape_cast %0 : vector<1x27x16xf32> to vector<27x16xf32>
    %2 = vector.extract_strided_slice %1 {offsets = [0, 1], sizes = [27, 1], strides = [1, 1]} : vector<27x16xf32> to vector<27x1xf32>
    %3 = vector.extract_strided_slice %1 {offsets = [0, 14], sizes = [27, 1], strides = [1, 1]} : vector<27x16xf32> to vector<27x1xf32>
    %4 = tpu.concatenate %2, %1, %3 in 1 : vector<27x1xf32>, vector<27x16xf32>, vector<27x1xf32> -> vector<27x18xf32>
    %5 = tpu.iota {dimensions = array<i32: 0>} : vector<18x8xi32>
    %6 = tpu.iota {dimensions = array<i32: 1>} : vector<18x8xi32>
    %c2_i32 = arith.constant 2 : i32
    %7 = vector.broadcast %c2_i32 : i32 to vector<18x8xi32>
    %8 = arith.muli %7, %6 : vector<18x8xi32>
    %c0_i32 = arith.constant 0 : i32
    %9 = vector.broadcast %c0_i32 : i32 to vector<18x8xi32>
    %10 = arith.addi %8, %9 : vector<18x8xi32>
    %11 = arith.cmpi eq, %5, %10 : vector<18x8xi32>
    %12 = arith.extui %11 : vector<18x8xi1> to vector<18x8xi32>
    %13 = arith.sitofp %12 : vector<18x8xi32> to vector<18x8xf32>
    %c2_i32_2 = arith.constant 2 : i32
    %14 = vector.broadcast %c2_i32_2 : i32 to vector<18x8xi32>
    %15 = arith.muli %14, %6 : vector<18x8xi32>
    %c1_i32 = arith.constant 1 : i32
    %16 = vector.broadcast %c1_i32 : i32 to vector<18x8xi32>
    %17 = arith.addi %15, %16 : vector<18x8xi32>
    %18 = arith.cmpi eq, %5, %17 : vector<18x8xi32>
    %19 = arith.extui %18 : vector<18x8xi1> to vector<18x8xi32>
    %20 = arith.sitofp %19 : vector<18x8xi32> to vector<18x8xf32>
    %c2_i32_3 = arith.constant 2 : i32
    %21 = vector.broadcast %c2_i32_3 : i32 to vector<18x8xi32>
    %22 = arith.muli %21, %6 : vector<18x8xi32>
    %c2_i32_4 = arith.constant 2 : i32
    %23 = vector.broadcast %c2_i32_4 : i32 to vector<18x8xi32>
    %24 = arith.addi %22, %23 : vector<18x8xi32>
    %25 = arith.cmpi eq, %5, %24 : vector<18x8xi32>
    %26 = arith.extui %25 : vector<18x8xi1> to vector<18x8xi32>
    %27 = arith.sitofp %26 : vector<18x8xi32> to vector<18x8xf32>
    %cst = arith.constant dense<0.000000e+00> : vector<27x8xf32>
    %28 = tpu.matmul %4, %13, %cst {dimension_numbers = #tpu.dot_dimension_numbers<[1], [0], [0], [1], [0, 0, 1, 1], [], []>} : vector<27x18xf32>, vector<18x8xf32>, vector<27x8xf32> -> vector<27x8xf32>
    %cst_5 = arith.constant dense<0.000000e+00> : vector<27x8xf32>
    %29 = tpu.matmul %4, %20, %cst_5 {dimension_numbers = #tpu.dot_dimension_numbers<[1], [0], [0], [1], [0, 0, 1, 1], [], []>} : vector<27x18xf32>, vector<18x8xf32>, vector<27x8xf32> -> vector<27x8xf32>
    %cst_6 = arith.constant dense<0.000000e+00> : vector<27x8xf32>
    %30 = tpu.matmul %4, %27, %cst_6 {dimension_numbers = #tpu.dot_dimension_numbers<[1], [0], [0], [1], [0, 0, 1, 1], [], []>} : vector<27x18xf32>, vector<18x8xf32>, vector<27x8xf32> -> vector<27x8xf32>
    %31 = tpu.concatenate %28, %29, %30 in 0 : vector<27x8xf32>, vector<27x8xf32>, vector<27x8xf32> -> vector<81x8xf32>
    %c0_7 = arith.constant 0 : index
    %c0_8 = arith.constant 0 : index
    %32 = vector.load %arg2[%c0_7, %c0_8] : memref<40x81xf32, #tpu.memory_space<vmem>>, vector<40x81xf32>
    %cst_9 = arith.constant dense<0.000000e+00> : vector<40x8xf32>
    %33 = tpu.matmul %32, %31, %cst_9 {dimension_numbers = #tpu.dot_dimension_numbers<[1], [0], [0], [1], [0, 0, 1, 1], [], []>} : vector<40x81xf32>, vector<81x8xf32>, vector<40x8xf32> -> vector<40x8xf32>
    %c0_10 = arith.constant 0 : index
    %c0_11 = arith.constant 0 : index
    %34 = vector.load %arg3[%c0_10, %c0_11] : memref<40x1xf32, #tpu.memory_space<vmem>>, vector<40x1xf32>
    %35 = vector.broadcast %34 : vector<40x1xf32> to vector<40x8xf32>
    %36 = arith.addf %33, %35 : vector<40x8xf32>
    %cst_12 = arith.constant 0.000000e+00 : f32
    %37 = vector.broadcast %cst_12 : f32 to vector<40x8xf32>
    %38 = arith.cmpf oge, %36, %37 : vector<40x8xf32>
    %cst_13 = arith.constant 2.000000e-01 : f32
    %39 = vector.broadcast %cst_13 : f32 to vector<40x8xf32>
    %40 = arith.mulf %39, %36 : vector<40x8xf32>
    %41 = arith.select %38, %36, %40 : vector<40x8xi1>, vector<40x8xf32>
    %42 = vector.extract_strided_slice %41 {offsets = [0, 1], sizes = [40, 1], strides = [1, 1]} : vector<40x8xf32> to vector<40x1xf32>
    %43 = vector.extract_strided_slice %41 {offsets = [0, 6], sizes = [40, 1], strides = [1, 1]} : vector<40x8xf32> to vector<40x1xf32>
    %44 = tpu.concatenate %42, %41, %43 in 1 : vector<40x1xf32>, vector<40x8xf32>, vector<40x1xf32> -> vector<40x10xf32>
    %45 = tpu.iota {dimensions = array<i32: 0>} : vector<10x4xi32>
    %46 = tpu.iota {dimensions = array<i32: 1>} : vector<10x4xi32>
    %c2_i32_14 = arith.constant 2 : i32
    %47 = vector.broadcast %c2_i32_14 : i32 to vector<10x4xi32>
    %48 = arith.muli %47, %46 : vector<10x4xi32>
    %c0_i32_15 = arith.constant 0 : i32
    %49 = vector.broadcast %c0_i32_15 : i32 to vector<10x4xi32>
    %50 = arith.addi %48, %49 : vector<10x4xi32>
    %51 = arith.cmpi eq, %45, %50 : vector<10x4xi32>
    %52 = arith.extui %51 : vector<10x4xi1> to vector<10x4xi32>
    %53 = arith.sitofp %52 : vector<10x4xi32> to vector<10x4xf32>
    %c2_i32_16 = arith.constant 2 : i32
    %54 = vector.broadcast %c2_i32_16 : i32 to vector<10x4xi32>
    %55 = arith.muli %54, %46 : vector<10x4xi32>
    %c1_i32_17 = arith.constant 1 : i32
    %56 = vector.broadcast %c1_i32_17 : i32 to vector<10x4xi32>
    %57 = arith.addi %55, %56 : vector<10x4xi32>
    %58 = arith.cmpi eq, %45, %57 : vector<10x4xi32>
    %59 = arith.extui %58 : vector<10x4xi1> to vector<10x4xi32>
    %60 = arith.sitofp %59 : vector<10x4xi32> to vector<10x4xf32>
    %c2_i32_18 = arith.constant 2 : i32
    %61 = vector.broadcast %c2_i32_18 : i32 to vector<10x4xi32>
    %62 = arith.muli %61, %46 : vector<10x4xi32>
    %c2_i32_19 = arith.constant 2 : i32
    %63 = vector.broadcast %c2_i32_19 : i32 to vector<10x4xi32>
    %64 = arith.addi %62, %63 : vector<10x4xi32>
    %65 = arith.cmpi eq, %45, %64 : vector<10x4xi32>
    %66 = arith.extui %65 : vector<10x4xi1> to vector<10x4xi32>
    %67 = arith.sitofp %66 : vector<10x4xi32> to vector<10x4xf32>
    %cst_20 = arith.constant dense<0.000000e+00> : vector<40x4xf32>
    %68 = tpu.matmul %44, %53, %cst_20 {dimension_numbers = #tpu.dot_dimension_numbers<[1], [0], [0], [1], [0, 0, 1, 1], [], []>} : vector<40x10xf32>, vector<10x4xf32>, vector<40x4xf32> -> vector<40x4xf32>
    %cst_21 = arith.constant dense<0.000000e+00> : vector<40x4xf32>
    %69 = tpu.matmul %44, %60, %cst_21 {dimension_numbers = #tpu.dot_dimension_numbers<[1], [0], [0], [1], [0, 0, 1, 1], [], []>} : vector<40x10xf32>, vector<10x4xf32>, vector<40x4xf32> -> vector<40x4xf32>
    %cst_22 = arith.constant dense<0.000000e+00> : vector<40x4xf32>
    %70 = tpu.matmul %44, %67, %cst_22 {dimension_numbers = #tpu.dot_dimension_numbers<[1], [0], [0], [1], [0, 0, 1, 1], [], []>} : vector<40x10xf32>, vector<10x4xf32>, vector<40x4xf32> -> vector<40x4xf32>
    %71 = tpu.concatenate %68, %69, %70 in 0 : vector<40x4xf32>, vector<40x4xf32>, vector<40x4xf32> -> vector<120x4xf32>
    %c0_23 = arith.constant 0 : index
    %c0_24 = arith.constant 0 : index
    %72 = vector.load %arg4[%c0_23, %c0_24] : memref<48x120xf32, #tpu.memory_space<vmem>>, vector<48x120xf32>
    %cst_25 = arith.constant dense<0.000000e+00> : vector<48x4xf32>
    %73 = tpu.matmul %72, %71, %cst_25 {dimension_numbers = #tpu.dot_dimension_numbers<[1], [0], [0], [1], [0, 0, 1, 1], [], []>} : vector<48x120xf32>, vector<120x4xf32>, vector<48x4xf32> -> vector<48x4xf32>
    %c0_26 = arith.constant 0 : index
    %c0_27 = arith.constant 0 : index
    %74 = vector.load %arg5[%c0_26, %c0_27] : memref<48x1xf32, #tpu.memory_space<vmem>>, vector<48x1xf32>
    %75 = vector.broadcast %74 : vector<48x1xf32> to vector<48x4xf32>
    %76 = arith.addf %73, %75 : vector<48x4xf32>
    %cst_28 = arith.constant 0.000000e+00 : f32
    %77 = vector.broadcast %cst_28 : f32 to vector<48x4xf32>
    %78 = arith.cmpf oge, %76, %77 : vector<48x4xf32>
    %cst_29 = arith.constant 2.000000e-01 : f32
    %79 = vector.broadcast %cst_29 : f32 to vector<48x4xf32>
    %80 = arith.mulf %79, %76 : vector<48x4xf32>
    %81 = arith.select %78, %76, %80 : vector<48x4xi1>, vector<48x4xf32>
    %c0_30 = arith.constant 0 : index
    %c0_31 = arith.constant 0 : index
    %c0_32 = arith.constant 0 : index
    %82 = vector.load %arg6[%c0_30, %c0_31, %c0_32] : memref<1x48x4xf32, #tpu.memory_space<vmem>>, vector<1x48x4xf32>
    %83 = vector.shape_cast %82 : vector<1x48x4xf32> to vector<48x4xf32>
    %84 = vector.shape_cast %81 : vector<48x4xf32> to vector<1x48x4xf32>
    tpu.vector_store %arg6[%c0_30, %c0_31, %c0_32], %84 {strides = array<i32>} : memref<1x48x4xf32, #tpu.memory_space<vmem>>, vector<1x48x4xf32>,
    return
  }
  func.func @transform_0(%arg0: i32) -> (i32, i32, i32) {
    %c0_i32 = arith.constant 0 : i32
    %c0_i32_0 = arith.constant 0 : i32
    %c0_i32_1 = arith.constant 0 : i32
    return %arg0, %c0_i32, %c0_i32_0 : i32, i32, i32
  }
  func.func @transform_1(%arg0: i32) -> (i32, i32) {
    %c0_i32 = arith.constant 0 : i32
    %c0_i32_0 = arith.constant 0 : i32
    %c0_i32_1 = arith.constant 0 : i32
    return %c0_i32, %c0_i32_0 : i32, i32
  }
  func.func @transform_2(%arg0: i32) -> (i32, i32) {
    %c0_i32 = arith.constant 0 : i32
    %c0_i32_0 = arith.constant 0 : i32
    %c0_i32_1 = arith.constant 0 : i32
    return %c0_i32, %c0_i32_0 : i32, i32
  }
  func.func @transform_3(%arg0: i32) -> (i32, i32) {
    %c0_i32 = arith.constant 0 : i32
    %c0_i32_0 = arith.constant 0 : i32
    %c0_i32_1 = arith.constant 0 : i32
    return %c0_i32, %c0_i32_0 : i32, i32
  }
  func.func @transform_4(%arg0: i32) -> (i32, i32) {
    %c0_i32 = arith.constant 0 : i32
    %c0_i32_0 = arith.constant 0 : i32
    %c0_i32_1 = arith.constant 0 : i32
    return %c0_i32, %c0_i32_0 : i32, i32
  }
  func.func @transform_5(%arg0: i32) -> (i32, i32, i32) {
    %c0_i32 = arith.constant 0 : i32
    %c0_i32_0 = arith.constant 0 : i32
    %c0_i32_1 = arith.constant 0 : i32
    return %arg0, %c0_i32, %c0_i32_0 : i32, i32, i32
  }
}

</mosaic_0001>

<bundles_post_ra>
// kernel: encoder_forward.1
= control target key start
LH: loop header
LB: loop body
LE: loop exit
PB: predicated region body
PF: predicated region fallthrough
CT: control target
= control target key end

     0   :  { %s1083_s18 = smov 0   ;;  %s1359_s0 = inlined_call_operand.vmem [shape: f32[2,27,16], index: 0, kind: input, shape index: {}]   ;;  %s1360_s1 = inlined_call_operand.vmem [shape: f32[40,81], index: 1, kind: input, shape index: {}]   ;;  %s1361_s2 = inlined_call_operand.vmem [shape: f32[40,1], index: 2, kind: input, shape index: {}]   ;;  %s1362_s3 = inlined_call_operand.vmem [shape: f32[48,120], index: 3, kind: input, shape index: {}]   ;;  %s1363_s4 = inlined_call_operand.vmem [shape: f32[48,1], index: 4, kind: input, shape index: {}]   ;;  %s1364_s5 = inlined_call_operand.vmem [shape: f32[2,48,4], index: 5, kind: output, shape index: {}]  }
   0x1 LB: > { %s918_s19 = sadd.s32 4294967295, %s1045_s18   ;;  %p922_p0 = scmp.ge.s32.totalorder %s1045_s18, 1  ;;  %s1045_s18 = sphi %s1083_s18, %s15_s18  }
   0x2   : > { %p187_p1 = scmp.lt.s32.totalorder %s1045_s18, 3 }
   0x4   : > { %p188_p2 = pnand %p922_p0, %p187_p1 }
   0x5   : > { %p215_p3 = scmp.lt.s32.totalorder (!%p188_p2), %s918_s19, 1  ;;  %s1047_s24 = smov (!%p188_p2), 3  }
   0x6   : > { %191 = sbr.rel (%p188_p2) target bundleno = 933 (0x3a5), region = 40  ;;  %s1048_s25 = smov (!%p188_p2), 127  }
   0x7   : > { %s1049_s26 = smov (!%p188_p2), 1  }
   0xb   : > { %s1366_s19 = smov (!%p215_p3, %s918_s19), 1  ;;  %v279_v4 = vlaneseq  ;;  %vm328_vm0 = vcmask 1041408   ;;  %v1050_v11 = vmov 0.0   ;;  %v1051_v14 = vmov 1.0   ;;  %v464_v48 = vld [vmem:[%s1361_s2] sm:$0xff]  ;;  %v465_v52 = vld [vmem:[%s1361_s2 + $0x8] sm:$0xff] }
   0xc   : > { %s991_s20 = sshll.u32 %s1366_s19, 5  ;;  %vm269_vm10 = vcmask 7168   ;;  %vm274_vm11 = vcmask 138240   ;;  %vm315_vm12 = vcmask 146432   ;;  %vm510_vm13 = vcmask 1040384   ;;  %s1021_s28 = smul.u32 48, %s1366_s19 }
   0xd   : > { %s219_s23 = scalar_lea.vmem %s1359_s0, %s991_s20  ;;  %v284_v5 = vand.u32 127, %v279_v4  ;;  %v1109_v6 = vshrl.u32 %v279_v4, 7  ;;  %v1052_v51 = vmov 0   ;;  %vm445_vm14 = vcmask 1045504  }
   0xe   : > { %v228_v0 = vld [vmem:[%s219_s23 + $0x18] sm:$0x7]  ;;  %v225_v1 = vld [vmem:[%s219_s23] sm:$0xff]  ;;  %v226_v2 = vld [vmem:[%s219_s23 + $0x8] sm:$0xff]  ;;  %1036 = vset.pattern.permute.xlu0 %v1052_v51  ;;  %1037 = vset.pattern.permute.xlu1 %v1052_v51  ;;  %vm429_vm15 = vcmask 1042432   ;;  %s1342_s6 = scalar_lea.vmem %s1364_s5, %s1021_s28 }
   0xf   : > { %263 = vrot.lane.b32.xlu1 %v228_v0, %s1047_s24  ;;  %239 = vrot.lane.b32.xlu0 %v228_v0, %s1048_s25  ;;  %v227_v3 = vld [vmem:[%s219_s23 + $0x10] sm:$0xff]  ;;  %v1111_v7 = vmul.u32 2, %v284_v5  ;;  %v282_v8 = vadd.s32 16, %v1109_v6  ;;  %v1118_v10 = vadd.s32 8, %v1109_v6 }
  0x10   : > { %245 = vrot.lane.b32.xlu2 %v225_v1, %s1049_s26 }
  0x11   : > { %v1115_v9 = vadd.s32 1, %v1111_v7  ;;  %vm288_vm1 = vcmp.eq.s32.totalorder %v282_v8, %v1111_v7  ;;  %vm287_vm3 = vcmp.eq.s32.totalorder %v1118_v10, %v1111_v7  ;;  %vm286_vm5 = vcmp.eq.s32.totalorder %v1109_v6, %v1111_v7  ;;  %1038 = vset.pattern.permute.xlu2 %v1052_v51 }
  0x12   : > { %v928_v12 = vsel %vm288_vm1, 1.0, %v1050_v11  ;;  %v305_v15 = vadd.s32 2, %v1111_v7  ;;  %vm494_vm1 = vcmask 662528  }
  0x13   : > { %vm298_vm2 = vcmp.eq.s32.totalorder %v282_v8, %v1115_v9  ;;  %vm297_vm4 = vcmp.eq.s32.totalorder %v1118_v10, %v1115_v9  ;;  %935 = vmatpush.msk.msra.mxu0 %vm328_vm0, %v928_v12  ;;  %vm296_vm6 = vcmp.eq.s32.totalorder %v1109_v6, %v1115_v9  ;;  %v459_v12 = vld [vmem:[%s1360_s1] sm:$0xff] }
  0x14   : > { %v931_v13 = vsel %vm298_vm2, 1.0, %v1050_v11  ;;  %vm308_vm7 = vcmp.eq.s32.totalorder %v282_v8, %v305_v15  ;;  %vm307_vm8 = vcmp.eq.s32.totalorder %v1118_v10, %v305_v15  ;;  %vm306_vm9 = vcmp.eq.s32.totalorder %v1109_v6, %v305_v15  ;;  %v466_v8 = vld [vmem:[%s1361_s2 + $0x10] sm:$0xff] }
  0x15   : > { %942 = vmatpush.msk.msra.mxu1 %vm328_vm0, %v931_v13  ;;  %992 = vmatpush.msk.msra.mxu2 %vm328_vm0, %v931_v13  ;;  %v934_v16 = vsel %vm308_vm7, 1.0, %v1050_v11  ;;  %v933_v27 = vsel %vm307_vm8, 1.0, %v1050_v11  ;;  %v460_v13 = vld [vmem:[%s1360_s1 + $0x8] sm:$0xff]  ;;  %v927_v15 = vsel %vm287_vm3, 1.0, %v1050_v11 }
  0x16   : > { %936 = vmatpush.msk.msra.mxu0 %vm287_vm3, %v1051_v14 }
  0x17   : > { %251 = vrot.lane.b32.xlu0 %v228_v0, %s1049_s26  ;;  %233 = vrot.lane.b32.xlu1 %v225_v1, %s1048_s25  ;;  %v467_v0 = vld [vmem:[%s1361_s2 + $0x18] sm:$0xff] }
  0x18   : > { %257 = vrot.lane.b32.xlu2 %v225_v1, %s1047_s24  ;;  %943 = vmatpush.msk.msra.mxu1 %vm297_vm4, %v1051_v14 }
  0x19   : > { %993 = vmatpush.msk.msra.mxu2 %vm297_vm4, %v1051_v14  ;;  %937 = vmatpush.msk.msra.mxu0 %vm286_vm5, %v1051_v14 }
  0x1a   : > { %944 = vmatpush.msk.msra.mxu1 %vm296_vm6, %v1051_v14 }
  0x1b   : > { %994 = vmatpush.msk.msra.mxu2 %vm296_vm6, %v1051_v14 }
  0x1d   : > { %949 = vmatpush.msk.msrb.mxu2 %vm328_vm0, %v934_v16  ;;  %v468_v16 = vld [vmem:[%s1361_s2 + $0x20] sm:$0xff] }
  0x1f   : > { %235 = vrot.lane.b32.xlu0 %v226_v2, %s1048_s25  ;;  %247 = vrot.lane.b32.xlu1 %v226_v2, %s1049_s26 }
  0x20   : > { %259 = vrot.lane.b32.xlu2 %v226_v2, %s1047_s24  ;;  %950 = vmatpush.msk.msrb.mxu2 %vm307_vm8, %v1051_v14 }
  0x22   : > { %951 = vmatpush.msk.msrb.mxu2 %vm306_vm9, %v1051_v14 }
  0x27   : > { %237 = vrot.lane.b32.xlu0 %v227_v3, %s1048_s25  ;;  %249 = vrot.lane.b32.xlu1 %v227_v3, %s1049_s26 }
  0x28   : > { %261 = vrot.lane.b32.xlu2 %v227_v3, %s1047_s24 }
  0x2f   : > { %471 = vperm.xlu0 %1036, %v464_v48   ;;  %476 = vperm.xlu1 %1037, %v465_v52   ;;  %v752_v48 = vld [vmem:[%s1363_s4 + $0x20] sm:$0xff] }
  0x30   : > { %481 = vperm.xlu2 %1038, %v466_v8  }
  0x37   : > { %486 = vperm.xlu1 %1037, %v467_v0  }
  0x38   : > { %491 = vperm.xlu2 %1038, %v468_v16  }
  0x6a   : > { %v246_v17 = vpop.permute.xlu2 %245 }
  0x72   : > { %v258_v20 = vpop.permute.xlu2 %257 }
  0x7a   : > { %v260_v28 = vpop.permute.xlu2 %259 }
  0x81   : > { %v264_v18 = vpop.permute.xlu1 %263  ;;  %v240_v19 = vpop.permute.xlu0 %239 }
  0x82   : > { %v262_v33 = vpop.permute.xlu2 %261 }
  0x89   : > { %v252_v21 = vpop.permute.xlu0 %251  ;;  %v234_v22 = vpop.permute.xlu1 %233 }
  0x8a   : > { %v273_v23 = vsel %vm269_vm10, %v240_v19, %v252_v21  ;;  %v270_v24 = vsel %vm269_vm10, %v234_v22, %v246_v17  ;;  %v461_v17 = vld [vmem:[%s1360_s1 + $0x10] sm:$0xff]  ;;  %v463_v19 = vld [vmem:[%s1360_s1 + $0x20] sm:$0xff] }
  0x8b   : > { %v275_v25 = vsel %vm274_vm11, %v270_v24, %v258_v20  ;;  %v278_v26 = vsel %vm274_vm11, %v273_v23, %v264_v18  ;;  %v462_v18 = vld [vmem:[%s1360_s1 + $0x18] sm:$0xff] }
  0x8c   : > { %938 = vmatmul.msk.f32.vlgmr.msra.gmra.mxu0 %vm315_vm12, %v275_v25  ;;  %945 = vmatmul.msk.f32.vlgmr.msra.gmra.mxu1 %vm315_vm12, %v275_v25 }
  0x8d   : > { %948 = vmatmul.msk.f32.vlgmr.msra.gmra.mxu2 %vm315_vm12, %v278_v26 }
  0x8e   : > { %976 = vmatpush.msk.msra.mxu2 %vm328_vm0, %v933_v27 }
  0x90   : > { %977 = vmatpush.msk.msra.mxu2 %vm306_vm9, %v1051_v14  ;;  %vm615_vm9 = vcmask 72704  }
  0x91   : > { %v236_v29 = vpop.permute.xlu0 %235  ;;  %v248_v30 = vpop.permute.xlu1 %247 }
  0x92   : > { %v271_v31 = vsel %vm269_vm10, %v236_v29, %v248_v30  ;;  %v482_v30 = vpop.permute.xlu2 %481 }
  0x93   : > { %v276_v32 = vsel %vm274_vm11, %v271_v31, %v260_v28 }
  0x94   : > { %939 = vmatmul.msk.f32.gmra.mxu0 %vm315_vm12, %v276_v32  ;;  %946 = vmatmul.msk.f32.gmra.mxu1 %vm315_vm12, %v276_v32 }
  0x95   : > { %952 = vmatmul.msk.f32.vlgmr.msrb.gmra.mxu2 %vm315_vm12, %v275_v25 }
  0x99   : > { %v238_v34 = vpop.permute.xlu0 %237  ;;  %v250_v35 = vpop.permute.xlu1 %249 }
  0x9a   : > { %v272_v36 = vsel %vm269_vm10, %v238_v34, %v250_v35 }
  0x9b   : > { %v277_v37 = vsel %vm274_vm11, %v272_v36, %v262_v33  ;;  %vm621_vm11 = vcmask 80896  }
  0x9c   : > { %940 = vmatmul.msk.f32.gmra.mxu0 %vm315_vm12, %v277_v37  ;;  %947 = vmatmul.msk.f32.gmra.mxu1 %vm315_vm12, %v277_v37 }
  0x9d   : > { %953 = vmatmul.msk.f32.gmra.mxu2 %vm315_vm12, %v276_v32 }
  0xa1   : > { %v472_v7 = vpop.permute.xlu0 %471  ;;  %v477_v25 = vpop.permute.xlu1 %476 }
  0xa4   : > { %941 = vmatmul.msk.f32.gmra.mxu0 %vm315_vm12, %v278_v26 }
  0xa5   : > { %954 = vmatmul.msk.f32.gmra.mxu2 %vm315_vm12, %v277_v37 }
  0xa9   : > { %v487_v34 = vpop.permute.xlu1 %486 }
  0xad   : > { %955 = vmatmul.msk.f32.gmra.mxu2 %vm315_vm12, %v278_v26 }
 0x109   : > { %v381_v40 = vpop.f32.mrf.mxu1  ;;  %v1197_v41 = vpop.f32.mrf.mxu0 }
 0x10a   : > { %v430_v1 = vrot.slane %v381_v40, 5 }
 0x110   : > { %v390_v38 = vpop.f32.mrf.mxu2 }
 0x111   : > { %v384_v43 = vpop.f32.mrf.mxu1  ;;  %v352_v45 = vpop.f32.mrf.mxu0  ;;  %v435_v57 = vrot.slane %v390_v38, 5 }
 0x112   : > { %v431_v62 = vrot.slane %v384_v43, 5 }
 0x114   : > { %v432_v4 = vsel %vm429_vm15, %v430_v1, %v431_v62 }
 0x118   : > { %v413_v39 = vpop.f32.mrf.mxu2 }
 0x119   : > { %v387_v46 = vpop.f32.mrf.mxu1  ;;  %v355_v53 = vpop.f32.mrf.mxu0  ;;  %v446_v58 = vrot.slane %v413_v39, 2 }
 0x11a   : > { %v433_v54 = vrot.slane %v387_v46, 5  ;;  %v492_v39 = vpop.permute.xlu2 %491  ;;  %v748_v46 = vld [vmem:[%s1363_s4] sm:$0xff] }
 0x11c   : > { %v436_v60 = vsel %vm429_vm15, %v433_v54, %v435_v57  ;;  %v434_v2 = vsel %vm429_vm15, %v431_v62, %v433_v54 }
 0x11d   : > { %v458_v63 = vsel %vm445_vm14, %v436_v60, %v446_v58 }
 0x120   : > { %v416_v42 = vpop.f32.mrf.mxu2 }
 0x121   : > { %v447_v56 = vrot.slane %v416_v42, 2  ;;  %v358_v3 = vpop.f32.mrf.mxu0 }
 0x122   : > { %v457_v5 = vsel %vm429_vm15, %v358_v3, %v430_v1 }
 0x123   : > { %v448_v61 = vsel %vm445_vm14, %v446_v58, %v447_v56 }
 0x128   : > { %v419_v44 = vpop.f32.mrf.mxu2 }
 0x129   : > { %v449_v49 = vrot.slane %v419_v44, 2  ;;  %v750_v44 = vld [vmem:[%s1363_s4 + $0x10] sm:$0xff] }
 0x12b   : > { %v450_v59 = vsel %vm445_vm14, %v447_v56, %v449_v49 }
 0x130   : > { %v422_v47 = vpop.f32.mrf.mxu2 }
 0x131   : > { %v451_v50 = vrot.slane %v422_v47, 2  ;;  %v753_v47 = vld [vmem:[%s1363_s4 + $0x28] sm:$0xff] }
 0x133   : > { %956 = vmatpush.msk.msrb.mxu0 %vm510_vm13, %v451_v50  ;;  %995 = vmatpush.msk.msra.mxu3 %vm510_vm13, %v451_v50  ;;  %v452_v55 = vsel %vm445_vm14, %v449_v49, %v451_v50  ;;  %v751_v49 = vld [vmem:[%s1363_s4 + $0x18] sm:$0xff]  ;;  %v930_v50 = vsel %vm297_vm4, 1.0, %v1050_v11 }
 0x134   : > { %969 = vmatpush.msk.msrb.mxu1 %vm328_vm0, %v930_v50 }
 0x135   : > { %519 = vmatpush.msrb.mxu0 %v452_v55  ;;  %996 = vmatpush.msra.mxu3 %v452_v55 }
 0x136   : > { %970 = vmatpush.msk.msrb.mxu1 %vm296_vm6, %v1051_v14  ;;  %vm856_vm6 = vcmask 31744  }
 0x137   : > { %520 = vmatpush.msrb.mxu0 %v450_v59  ;;  %997 = vmatpush.msra.mxu3 %v450_v59 }
 0x139   : > { %521 = vmatpush.msrb.mxu0 %v448_v61  ;;  %998 = vmatpush.msra.mxu3 %v448_v61 }
 0x13b   : > { %522 = vmatpush.msrb.mxu0 %v458_v63  ;;  %999 = vmatpush.msra.mxu3 %v458_v63 }
 0x13d   : > { %523 = vmatpush.msrb.mxu0 %v434_v2  ;;  %1000 = vmatpush.msra.mxu3 %v434_v2 }
 0x13f   : > { %524 = vmatpush.msrb.mxu0 %v432_v4  ;;  %1001 = vmatpush.msra.mxu3 %v432_v4 }
 0x141   : > { %525 = vmatpush.msrb.mxu0 %v457_v5  ;;  %1002 = vmatpush.msra.mxu3 %v457_v5 }
 0x143   : > { %526 = vmatpush.msrb.mxu0 %v355_v53  ;;  %1003 = vmatpush.msra.mxu3 %v355_v53 }
 0x145   : > { %527 = vmatpush.msrb.mxu0 %v352_v45  ;;  %1004 = vmatpush.msra.mxu3 %v352_v45  ;;  %v749_v45 = vld [vmem:[%s1363_s4 + $0x8] sm:$0xff] }
 0x147   : > { %528 = vmatpush.msrb.mxu0 %v1197_v41  ;;  %1005 = vmatpush.msra.mxu3 %v1197_v41 }
 0x148   : > { %957 = vmatmul.msk.f32.vlgmr.msrb.gmra.mxu0 %vm494_vm1, %v459_v12  ;;  %958 = vmatmul.msk.f32.vlgmr.msra.gmra.mxu3 %vm494_vm1, %v460_v13 }
 0x149   : > { %962 = vmatpush.msk.msra.mxu0 %vm328_vm0, %v927_v15  ;;  %vm784_vm0 = vcmask 982016  }
 0x14b   : > { %963 = vmatpush.msk.msra.mxu0 %vm286_vm5, %v1051_v14 }
 0x150   : > { %959 = vmatmul.msk.f32.gmra.mxu3 %vm494_vm1, %v461_v17 }
 0x158   : > { %960 = vmatmul.msk.f32.gmra.mxu3 %vm494_vm1, %v462_v18 }
 0x160   : > { %961 = vmatmul.msk.f32.gmra.mxu3 %vm494_vm1, %v463_v19 }
 0x1c5   : > { %v530_v20 = vpop.f32.mrf.mxu0 }
 0x1c6   : > { %v531_v21 = vadd.f32 %v530_v20, %v472_v7 }
 0x1c8   : > { %v550_v22 = vmul.f32 0.2, %v531_v21  ;;  %vm545_vm2 = vcmp.ge.f32.partialorder %v531_v21, 0.0 }
 0x1ca   : > { %v555_v23 = vsel %vm545_vm2, %v531_v21, %v550_v22 }
 0x1cb   : > { %v533_v24 = vpop.f32.mrf.mxu3  ;;  %595 = vrot.lane.b32.xlu2 %v555_v23, %s1047_s24  ;;  %580 = vrot.lane.b32.xlu1 %v555_v23, %s1049_s26 }
 0x1cc   : > { %565 = vrot.lane.b32.xlu0 %v555_v23, %s1048_s25  ;;  %v534_v26 = vadd.f32 %v533_v24, %v477_v25 }
 0x1ce   : > { %v551_v27 = vmul.f32 0.2, %v534_v26  ;;  %vm546_vm3 = vcmp.ge.f32.partialorder %v534_v26, 0.0 }
 0x1d0   : > { %v556_v28 = vsel %vm546_vm3, %v534_v26, %v551_v27  ;;  %v742_v27 = vld [vmem:[%s1362_s3] sm:$0xff] }
 0x1d3   : > { %v536_v29 = vpop.f32.mrf.mxu3  ;;  %597 = vrot.lane.b32.xlu2 %v556_v28, %s1047_s24  ;;  %582 = vrot.lane.b32.xlu1 %v556_v28, %s1049_s26 }
 0x1d4   : > { %567 = vrot.lane.b32.xlu0 %v556_v28, %s1048_s25  ;;  %v537_v31 = vadd.f32 %v536_v29, %v482_v30  ;;  %v744_v28 = vld [vmem:[%s1362_s3 + $0x10] sm:$0xff]  ;;  %v743_v29 = vld [vmem:[%s1362_s3 + $0x8] sm:$0xff]  ;;  %v745_v30 = vld [vmem:[%s1362_s3 + $0x18] sm:$0xff] }
 0x1d6   : > { %v552_v32 = vmul.f32 0.2, %v537_v31  ;;  %vm547_vm5 = vcmp.ge.f32.partialorder %v537_v31, 0.0 }
 0x1d8   : > { %v557_v33 = vsel %vm547_vm5, %v537_v31, %v552_v32  ;;  %v746_v31 = vld [vmem:[%s1362_s3 + $0x20] sm:$0xff]  ;;  %v747_v32 = vld [vmem:[%s1362_s3 + $0x28] sm:$0xff] }
 0x1db   : > { %v539_v35 = vpop.f32.mrf.mxu3  ;;  %599 = vrot.lane.b32.xlu2 %v557_v33, %s1047_s24  ;;  %584 = vrot.lane.b32.xlu1 %v557_v33, %s1049_s26 }
 0x1dc   : > { %v540_v36 = vadd.f32 %v539_v35, %v487_v34  ;;  %569 = vrot.lane.b32.xlu0 %v557_v33, %s1048_s25 }
 0x1de   : > { %v553_v37 = vmul.f32 0.2, %v540_v36  ;;  %vm548_vm7 = vcmp.ge.f32.partialorder %v540_v36, 0.0 }
 0x1e0   : > { %v558_v38 = vsel %vm548_vm7, %v540_v36, %v553_v37 }
 0x1e3   : > { %v542_v40 = vpop.f32.mrf.mxu3  ;;  %601 = vrot.lane.b32.xlu2 %v558_v38, %s1047_s24  ;;  %586 = vrot.lane.b32.xlu1 %v558_v38, %s1049_s26 }
 0x1e4   : > { %v543_v41 = vadd.f32 %v542_v40, %v492_v39  ;;  %571 = vrot.lane.b32.xlu0 %v558_v38, %s1048_s25 }
 0x1e6   : > { %v554_v42 = vmul.f32 0.2, %v543_v41  ;;  %vm549_vm8 = vcmp.ge.f32.partialorder %v543_v41, 0.0 }
 0x1e8   : > { %v559_v43 = vsel %vm549_vm8, %v543_v41, %v554_v42 }
 0x1eb   : > { %603 = vrot.lane.b32.xlu2 %v559_v43, %s1047_s24  ;;  %588 = vrot.lane.b32.xlu1 %v559_v43, %s1049_s26 }
 0x1ec   : > { %573 = vrot.lane.b32.xlu0 %v559_v43, %s1048_s25 }
 0x1f3   : > { %766 = vperm.xlu2 %1038, %v750_v44   ;;  %761 = vperm.xlu1 %1037, %v749_v45  }
 0x1f4   : > { %756 = vperm.xlu0 %1036, %v748_v46  }
 0x1fb   : > { %781 = vperm.xlu2 %1038, %v753_v47   ;;  %776 = vperm.xlu1 %1037, %v752_v48  }
 0x1fc   : > { %771 = vperm.xlu0 %1036, %v751_v49  }
 0x225   : > { %v596_v51 = vpop.permute.xlu2 %595 }
 0x22d   : > { %v598_v56 = vpop.permute.xlu2 %597 }
 0x235   : > { %v600_v14 = vpop.permute.xlu2 %599 }
 0x23d   : > { %v581_v52 = vpop.permute.xlu1 %580  ;;  %v602_v61 = vpop.permute.xlu2 %601 }
 0x23e   : > { %v566_v53 = vpop.permute.xlu0 %565 }
 0x23f   : > { %v610_v54 = vsel %vm269_vm10, %v566_v53, %v581_v52 }
 0x240   : > { %v616_v55 = vsel %vm615_vm9, %v610_v54, %v596_v51 }
 0x241   : > { %964 = vmatmul.msk.f32.vlgmr.msra.gmra.mxu0 %vm621_vm11, %v616_v55  ;;  %971 = vmatmul.msk.f32.vlgmr.msrb.gmra.mxu1 %vm621_vm11, %v616_v55 }
 0x242   : > { %978 = vmatmul.msk.f32.vlgmr.msra.gmra.mxu2 %vm621_vm11, %v616_v55 }
 0x245   : > { %v583_v10 = vpop.permute.xlu1 %582  ;;  %v604_v4 = vpop.permute.xlu2 %603 }
 0x246   : > { %v568_v11 = vpop.permute.xlu0 %567 }
 0x247   : > { %v611_v6 = vsel %vm269_vm10, %v568_v11, %v583_v10 }
 0x248   : > { %v617_v9 = vsel %vm615_vm9, %v611_v6, %v598_v56 }
 0x249   : > { %965 = vmatmul.msk.f32.gmra.mxu0 %vm621_vm11, %v617_v9  ;;  %972 = vmatmul.msk.f32.gmra.mxu1 %vm621_vm11, %v617_v9 }
 0x24a   : > { %979 = vmatmul.msk.f32.gmra.mxu2 %vm621_vm11, %v617_v9 }
 0x24d   : > { %v585_v57 = vpop.permute.xlu1 %584  ;;  %v767_v38 = vpop.permute.xlu2 %766 }
 0x24e   : > { %v570_v58 = vpop.permute.xlu0 %569 }
 0x24f   : > { %v612_v59 = vsel %vm269_vm10, %v570_v58, %v585_v57 }
 0x250   : > { %v618_v60 = vsel %vm615_vm9, %v612_v59, %v600_v14 }
 0x251   : > { %966 = vmatmul.msk.f32.gmra.mxu0 %vm621_vm11, %v618_v60  ;;  %973 = vmatmul.msk.f32.gmra.mxu1 %vm621_vm11, %v618_v60 }
 0x252   : > { %980 = vmatmul.msk.f32.gmra.mxu2 %vm621_vm11, %v618_v60 }
 0x255   : > { %v587_v62 = vpop.permute.xlu1 %586  ;;  %v782_v11 = vpop.permute.xlu2 %781 }
 0x256   : > { %v572_v63 = vpop.permute.xlu0 %571 }
 0x257   : > { %v613_v0 = vsel %vm269_vm10, %v572_v63, %v587_v62 }
 0x258   : > { %v619_v1 = vsel %vm615_vm9, %v613_v0, %v602_v61 }
 0x259   : > { %967 = vmatmul.msk.f32.gmra.mxu0 %vm621_vm11, %v619_v1  ;;  %974 = vmatmul.msk.f32.gmra.mxu1 %vm621_vm11, %v619_v1 }
 0x25a   : > { %981 = vmatmul.msk.f32.gmra.mxu2 %vm621_vm11, %v619_v1 }
 0x25d   : > { %v589_v2 = vpop.permute.xlu1 %588 }
 0x25e   : > { %v574_v3 = vpop.permute.xlu0 %573 }
 0x25f   : > { %v614_v5 = vsel %vm269_vm10, %v574_v3, %v589_v2 }
 0x260   : > { %v620_v8 = vsel %vm615_vm9, %v614_v5, %v604_v4 }
 0x261   : > { %968 = vmatmul.msk.f32.gmra.mxu0 %vm621_vm11, %v620_v8  ;;  %975 = vmatmul.msk.f32.gmra.mxu1 %vm621_vm11, %v620_v8 }
 0x262   : > { %982 = vmatmul.msk.f32.gmra.mxu2 %vm621_vm11, %v620_v8 }
 0x265   : > { %v762_v41 = vpop.permute.xlu1 %761 }
 0x266   : > { %v757_v33 = vpop.permute.xlu0 %756 }
 0x26d   : > { %v777_v53 = vpop.permute.xlu1 %776 }
 0x26e   : > { %v772_v48 = vpop.permute.xlu0 %771 }
 0x2be   : > { %v692_v13 = vpop.f32.mrf.mxu1  ;;  %v657_v16 = vpop.f32.mrf.mxu0 }
 0x2c5   : > { %v727_v12 = vpop.f32.mrf.mxu2 }
 0x2c6   : > { %v695_v17 = vpop.f32.mrf.mxu1  ;;  %v660_v19 = vpop.f32.mrf.mxu0 }
 0x2cd   : > { %v730_v15 = vpop.f32.mrf.mxu2 }
 0x2ce   : > { %v698_v7 = vpop.f32.mrf.mxu1  ;;  %v663_v21 = vpop.f32.mrf.mxu0 }
 0x2d5   : > { %v733_v18 = vpop.f32.mrf.mxu2 }
 0x2d6   : > { %v701_v22 = vpop.f32.mrf.mxu1  ;;  %v666_v24 = vpop.f32.mrf.mxu0 }
 0x2dd   : > { %v736_v20 = vpop.f32.mrf.mxu2 }
 0x2de   : > { %v704_v25 = vpop.f32.mrf.mxu1  ;;  %v669_v26 = vpop.f32.mrf.mxu0 }
 0x2e5   : > { %v739_v23 = vpop.f32.mrf.mxu2 }
 0x2e6   : > { %804 = vmatpush.msra.mxu1 %v739_v23  ;;  %1006 = vmatpush.msrb.mxu3 %v739_v23 }
 0x2e8   : > { %805 = vmatpush.msra.mxu1 %v736_v20  ;;  %1007 = vmatpush.msrb.mxu3 %v736_v20 }
 0x2ea   : > { %806 = vmatpush.msra.mxu1 %v733_v18  ;;  %1008 = vmatpush.msrb.mxu3 %v733_v18 }
 0x2ec   : > { %807 = vmatpush.msra.mxu1 %v730_v15  ;;  %1009 = vmatpush.msrb.mxu3 %v730_v15 }
 0x2ee   : > { %808 = vmatpush.msra.mxu1 %v727_v12  ;;  %1010 = vmatpush.msrb.mxu3 %v727_v12 }
 0x2f0   : > { %809 = vmatpush.msra.mxu1 %v704_v25  ;;  %1011 = vmatpush.msrb.mxu3 %v704_v25 }
 0x2f2   : > { %810 = vmatpush.msra.mxu1 %v701_v22  ;;  %1012 = vmatpush.msrb.mxu3 %v701_v22 }
 0x2f4   : > { %811 = vmatpush.msra.mxu1 %v698_v7  ;;  %1013 = vmatpush.msrb.mxu3 %v698_v7 }
 0x2f6   : > { %812 = vmatpush.msra.mxu1 %v695_v17  ;;  %1014 = vmatpush.msrb.mxu3 %v695_v17 }
 0x2f8   : > { %813 = vmatpush.msra.mxu1 %v692_v13  ;;  %1015 = vmatpush.msrb.mxu3 %v692_v13 }
 0x2fa   : > { %814 = vmatpush.msra.mxu1 %v669_v26  ;;  %1016 = vmatpush.msrb.mxu3 %v669_v26 }
 0x2fc   : > { %815 = vmatpush.msra.mxu1 %v666_v24  ;;  %1017 = vmatpush.msrb.mxu3 %v666_v24 }
 0x2fe   : > { %816 = vmatpush.msra.mxu1 %v663_v21  ;;  %1018 = vmatpush.msrb.mxu3 %v663_v21 }
 0x300   : > { %817 = vmatpush.msra.mxu1 %v660_v19  ;;  %1019 = vmatpush.msrb.mxu3 %v660_v19 }
 0x302   : > { %818 = vmatpush.msra.mxu1 %v657_v16  ;;  %1020 = vmatpush.msrb.mxu3 %v657_v16 }
 0x303   : > { %983 = vmatmul.msk.f32.vlgmr.msra.gmra.mxu1 %vm784_vm0, %v742_v27  ;;  %985 = vmatmul.msk.f32.vlgmr.msrb.gmra.mxu3 %vm784_vm0, %v744_v28 }
 0x30b   : > { %984 = vmatmul.msk.f32.gmra.mxu1 %vm784_vm0, %v743_v29  ;;  %986 = vmatmul.msk.f32.gmra.mxu3 %vm784_vm0, %v745_v30 }
 0x313   : > { %987 = vmatmul.msk.f32.gmra.mxu3 %vm784_vm0, %v746_v31 }
 0x31b   : > { %988 = vmatmul.msk.f32.gmra.mxu3 %vm784_vm0, %v747_v32 }
 0x380   : > { %v820_v34 = vpop.f32.mrf.mxu1 }
 0x381   : > { %v821_v35 = vadd.f32 %v820_v34, %v757_v33 }
 0x383   : > { %vm838_vm4 = vcmp.ge.f32.partialorder %v821_v35, 0.0  ;;  %v844_v36 = vmul.f32 0.2, %v821_v35 }
 0x385   : > { %v850_v37 = vsel %vm838_vm4, %v821_v35, %v844_v36 }
 0x386   : > { %857 = vst.msk [vmem:[%s1342_s6] sm:$0xff] %vm856_vm6, %v850_v37  ;;  %v826_v39 = vpop.f32.mrf.mxu3 }
 0x387   : > { %v827_v40 = vadd.f32 %v826_v39, %v767_v38 }
 0x388   : > { %v823_v42 = vpop.f32.mrf.mxu1 }
 0x389   : > { %vm840_vm10 = vcmp.ge.f32.partialorder %v827_v40, 0.0  ;;  %v846_v43 = vmul.f32 0.2, %v827_v40  ;;  %v824_v44 = vadd.f32 %v823_v42, %v762_v41 }
 0x38b   : > { %v852_v45 = vsel %vm840_vm10, %v827_v40, %v846_v43  ;;  %vm839_vm12 = vcmp.ge.f32.partialorder %v824_v44, 0.0  ;;  %v845_v46 = vmul.f32 0.2, %v824_v44 }
 0x38c   : > { %859 = vst.msk [vmem:[%s1342_s6 + $0x10] sm:$0xff] %vm856_vm6, %v852_v45 }
 0x38d   : > { %v851_v47 = vsel %vm839_vm12, %v824_v44, %v845_v46 }
 0x38e   : > { %858 = vst.msk [vmem:[%s1342_s6 + $0x8] sm:$0xff] %vm856_vm6, %v851_v47  ;;  %v829_v49 = vpop.f32.mrf.mxu3 }
 0x38f   : > { %v830_v50 = vadd.f32 %v829_v49, %v772_v48 }
 0x391   : > { %vm841_vm13 = vcmp.ge.f32.partialorder %v830_v50, 0.0  ;;  %v847_v51 = vmul.f32 0.2, %v830_v50 }
 0x393   : > { %v853_v52 = vsel %vm841_vm13, %v830_v50, %v847_v51 }
 0x394   : > { %860 = vst.msk [vmem:[%s1342_s6 + $0x18] sm:$0xff] %vm856_vm6, %v853_v52 }
 0x396   : > { %v832_v54 = vpop.f32.mrf.mxu3 }
 0x397   : > { %v833_v55 = vadd.f32 %v832_v54, %v777_v53 }
 0x399   : > { %vm842_vm14 = vcmp.ge.f32.partialorder %v833_v55, 0.0  ;;  %v848_v56 = vmul.f32 0.2, %v833_v55 }
 0x39b   : > { %v854_v10 = vsel %vm842_vm14, %v833_v55, %v848_v56 }
 0x39c   : > { %861 = vst.msk [vmem:[%s1342_s6 + $0x20] sm:$0xff] %vm856_vm6, %v854_v10 }
 0x39e   : > { %v835_v6 = vpop.f32.mrf.mxu3 }
 0x39f   : > { %v836_v9 = vadd.f32 %v835_v6, %v782_v11 }
 0x3a1   : > { %vm843_vm15 = vcmp.ge.f32.partialorder %v836_v9, 0.0  ;;  %v849_v14 = vmul.f32 0.2, %v836_v9 }
 0x3a3   : > { %v855_v57 = vsel %vm843_vm15, %v836_v9, %v849_v14 }
 0x3a4   : > { %862 = vst.msk [vmem:[%s1342_s6 + $0x28] sm:$0xff] %vm856_vm6, %v855_v57 }
 0x3a5 PF: > { %s15_s18 = sadd.s32 1, %s1045_s18  }
 0x3a6   : > { %p12_p4 = scmp.ge.s32.totalorder %s15_s18, 4  }
 0x3a8   :  { %14 = sbr.rel (!%p12_p4) target bundleno = 1 (0x1), region = 70 }

</bundles_post_ra>
